<compile_context>
chip_gen: v5e
topology: v5e:2x2
jax: 0.10.0
libtpu: 0.0.40
codegen_flags: <defaults>
</compile_context>

<pallas_src>
import jax
import jax.numpy as jnp
from jax.experimental import pallas as pl
from jax.experimental.pallas import tpu as pltpu


_OUT_PAD = 128          # lane-dense output slab width (true output width is 2)
_MAX_ROW_TILE = 512     # rows of pairs per grid step
_SPLIT_THRESHOLD = 256  # min padded pair-rows before splitting the grid (megacore)


def _round_up(value, multiple):
    return (value + multiple - 1) // multiple * multiple


def _head_kernel(xa_ref, xb_ref, w1a_ref, w1b_ref, b1_ref, w2_ref, b2_ref, o_ref):
    """out = tanh(xa @ W1a + xb @ W1b + b1) @ W2 + b2 for one row tile of pairs."""
    # dropout (eval) is the identity.
    xa = xa_ref[...].astype(jnp.bfloat16)                               # [TP, Hp]
    xb = xb_ref[...].astype(jnp.bfloat16)                               # [TP, Hp]
    h = jnp.dot(xa, w1a_ref[...], preferred_element_type=jnp.float32)   # MXU, f32 acc
    h += jnp.dot(xb, w1b_ref[...], preferred_element_type=jnp.float32)  # MXU, f32 acc
    h = jnp.tanh(h + b1_ref[...])                                       # bias bcast [1, Hp]
    # dropout (eval) is the identity.  Second matmul: bf16 operands, f32 acc.
    o = jnp.dot(h.astype(jnp.bfloat16), w2_ref[...],
                preferred_element_type=jnp.float32)                     # [TP, 128] lane-dense
    o_ref[...] = (o + b2_ref[...]).astype(o_ref.dtype)


def prepare_params(w_dense, b_dense, w_out, b_out, *, compute_dtype=jnp.bfloat16):
    """One-time parameter prep: split/transpose to row-major, pad to (8,128), cast.

    PyTorch nn.Linear stores weight as [out, in]; W_dense.T is split into
    W1a = W_dense[:, :H].T (even pair member) and W1b = W_dense[:, H:].T (odd)
    so the kernel never needs the concatenated [P, 2H] activation.  Zero padding
    is a no-op for real RoBERTa configs (H % 128 == 0).
    """
    H, twoH = w_dense.shape
    assert twoH == 2 * H and w_out.shape == (2, H)
    H_p = _round_up(H, 128)

    w1a = jnp.zeros((H_p, H_p), compute_dtype).at[:H, :H].set(
        w_dense[:, :H].T.astype(compute_dtype))
    w1b = jnp.zeros((H_p, H_p), compute_dtype).at[:H, :H].set(
        w_dense[:, H:].T.astype(compute_dtype))
    b1 = jnp.zeros((1, H_p), jnp.float32).at[:, :H].set(b_dense.astype(jnp.float32))
    # bf16 W2 (per perf review): second matmul runs native bf16 MXU passes.
    w2 = jnp.zeros((H_p, _OUT_PAD), compute_dtype).at[:H, :2].set(
        w_out.T.astype(compute_dtype))
    b2 = jnp.zeros((1, _OUT_PAD), jnp.float32).at[:, :2].set(b_out.astype(jnp.float32))
    return {"w1a": w1a, "w1b": w1b, "b1": b1, "w2": w2, "b2": b2}


@jax.jit
def roberta_classification_head(features, params):
    """features: [B, S, H] float32, B even. Returns logits [B // 2, 2] float32."""
    B, S, H = features.shape
    assert B % 2 == 0, "pairs of code snippets -> even batch"
    P = B // 2

    w1a, w1b = params["w1a"], params["w1b"]
    b1, w2, b2 = params["b1"], params["w2"], params["b2"]
    H_p = w1a.shape[0]

    if H % 128 == 0 and H_p == H:
        # Fused path: CLS gather + pair concat folded into the kernel's input DMA.
        # Collapsing (2 batch rows, S, H) into one row is a contiguous (free)
        # reshape; the CLS tokens of the pair are the H-wide column blocks at
        # block indices 0 and S of the flattened [P, 2*S*H] array.
        src = features.reshape(P, 2 * S * H)
        block_w, col_b = H, S
    else:
        # Ragged hidden size: materialize a lane-padded x (members at column
        # blocks 0 and 1 of width H_p).
        # TODO(synk): support ragged H in the fused DMA path as well.
        cls = features[:, 0, :].reshape(P, 2, H).astype(jnp.bfloat16)
        src = jnp.zeros((P, 2 * H_p), jnp.bfloat16)
        src = src.at[:, :H].set(cls[:, 0, :]).at[:, H_p:H_p + H].set(cls[:, 1, :])
        block_w, col_b = H_p, 1

    # Row-tile selection: split into >=2 grid steps once there is enough work so
    # the "parallel" axis shards across both TensorCores on v7x.
    P_rows = _round_up(P, 8)
    if P_rows >= _SPLIT_THRESHOLD:
        TP = min(_MAX_ROW_TILE, _round_up(pl.cdiv(P_rows, 2), 8))
    else:
        TP = P_rows
    n_tiles = pl.cdiv(P_rows, TP)
    out_rows = n_tiles * TP            # whole number of tiles -> no partial output blocks

    x_bytes = jnp.dtype(src.dtype).itemsize
    cost = pl.CostEstimate(
        flops=2 * out_rows * H_p * H_p * 2 + 2 * out_rows * H_p * _OUT_PAD,
        transcendentals=out_rows * H_p,                    # tanh
        bytes_accessed=(2 * out_rows * H_p * x_bytes       # xa + xb streams
                        + 2 * H_p * H_p * 2                # W1a + W1b (bf16)
                        + H_p * _OUT_PAD * 2               # W2 (bf16)
                        + out_rows * _OUT_PAD * 4),        # out slab (f32)
    )

    out = pl.pallas_call(
        _head_kernel,
        out_shape=jax.ShapeDtypeStruct((out_rows, _OUT_PAD), jnp.float32),
        grid=(n_tiles,),
        in_specs=[
            pl.BlockSpec((TP, block_w), lambda i: (i, 0)),       # CLS of pair member A
            pl.BlockSpec((TP, block_w), lambda i: (i, col_b)),   # CLS of pair member B
            pl.BlockSpec((H_p, H_p), lambda i: (0, 0)),          # W1a resident
            pl.BlockSpec((H_p, H_p), lambda i: (0, 0)),          # W1b resident
            pl.BlockSpec((1, H_p), lambda i: (0, 0)),            # b1 resident
            pl.BlockSpec((H_p, _OUT_PAD), lambda i: (0, 0)),     # W2 resident
            pl.BlockSpec((1, _OUT_PAD), lambda i: (0, 0)),       # b2 resident
        ],
        out_specs=pl.BlockSpec((TP, _OUT_PAD), lambda i: (i, 0)),
        compiler_params=pltpu.CompilerParams(
            dimension_semantics=("parallel",),                   # megacore on v7x
            vmem_limit_bytes=32 * 1024 * 1024),
        cost_estimate=cost,
    )(src, src, w1a, w1b, b1, w2, b2)

    return out[:P, :2]


def _reference(features, w_dense, b_dense, w_out, b_out):
    B, S, H = features.shape
    x = features[:, 0, :].reshape(B // 2, 2 * H)
    h = jnp.tanh(x @ w_dense.T + b_dense)
    return h @ w_out.T + b_out


def _make_inputs(key, batch, seq, hidden):
    k1, k2, k3, k4, k5 = jax.random.split(key, 5)
    features = jax.random.normal(k1, (batch, seq, hidden), dtype=jnp.float32)
    # PyTorch Linear stores weight as [out, in].
    w_dense = jax.random.normal(k2, (hidden, hidden * 2), dtype=jnp.float32) * 0.05
    b_dense = jax.random.normal(k3, (hidden,), dtype=jnp.float32) * 0.05
    w_out = jax.random.normal(k4, (2, hidden), dtype=jnp.float32) * 0.05
    b_out = jax.random.normal(k5, (2,), dtype=jnp.float32) * 0.05
    return features, w_dense, b_dense, w_out, b_out


if __name__ == "__main__":
    key = jax.random.PRNGKey(0)
    batch = 16       # must be even (pairs of snippets) -> P = 8 pairs
    seq = 8

    # Main path: hidden a multiple of 128 -> fused CLS-gather DMA path.
    hidden = 128
    features, w_dense, b_dense, w_out, b_out = _make_inputs(key, batch, seq, hidden)
    params = prepare_params(w_dense, b_dense, w_out, b_out)
    logits = jax.block_until_ready(roberta_classification_head(features, params))
    ref = _reference(features, w_dense, b_dense, w_out, b_out)
    assert logits.shape == (batch // 2, 2), logits.shape
    # bf16 MXU operands -> bf16-appropriate tolerance.
    assert jnp.allclose(logits, ref, atol=2e-2, rtol=2e-2), (logits, ref)

    # Fallback path: ragged hidden size (lane-padded materialized x).
    hidden2 = 32
    features2, w_dense2, b_dense2, w_out2, b_out2 = _make_inputs(key, batch, seq, hidden2)
    params2 = prepare_params(w_dense2, b_dense2, w_out2, b_out2)
    logits2 = jax.block_until_ready(roberta_classification_head(features2, params2))
    ref2 = _reference(features2, w_dense2, b_dense2, w_out2, b_out2)
    assert logits2.shape == (batch // 2, 2), logits2.shape
    assert jnp.allclose(logits2, ref2, atol=2e-2, rtol=2e-2), (logits2, ref2)

    print("KERNEL_OK")
</pallas_src>

<mosaic_0001>
module attributes {stable_mosaic.version = 11 : i64} {
  func.func @_head_kernel(%arg0: i32, %arg1: memref<8x128xf32, #tpu.memory_space<vmem>>, %arg2: memref<8x128xf32, #tpu.memory_space<vmem>>, %arg3: memref<128x128xbf16, #tpu.memory_space<vmem>>, %arg4: memref<128x128xbf16, #tpu.memory_space<vmem>>, %arg5: memref<1x128xf32, #tpu.memory_space<vmem>>, %arg6: memref<128x128xbf16, #tpu.memory_space<vmem>>, %arg7: memref<1x128xf32, #tpu.memory_space<vmem>>, %arg8: memref<8x128xf32, #tpu.memory_space<vmem>>) attributes {dimension_semantics = [#tpu.dimension_semantics<parallel>], iteration_bounds = array<i64: 1>, scalar_prefetch = 0 : i64, scratch_operands = 0 : i64, tpu.core_type = #tpu.core_type<tc>, window_params = [{transform_indices = @transform_0, window_bounds = array<i64: 8, 128>}, {transform_indices = @transform_1, window_bounds = array<i64: 8, 128>}, {pipeline_mode = #tpu.pipeline_mode<synchronous>, transform_indices = @transform_2, window_bounds = array<i64: 128, 128>}, {pipeline_mode = #tpu.pipeline_mode<synchronous>, transform_indices = @transform_3, window_bounds = array<i64: 128, 128>}, {pipeline_mode = #tpu.pipeline_mode<synchronous>, transform_indices = @transform_4, window_bounds = array<i64: 1, 128>}, {pipeline_mode = #tpu.pipeline_mode<synchronous>, transform_indices = @transform_5, window_bounds = array<i64: 128, 128>}, {pipeline_mode = #tpu.pipeline_mode<synchronous>, transform_indices = @transform_6, window_bounds = array<i64: 1, 128>}, {transform_indices = @transform_7, window_bounds = array<i64: 8, 128>}]} {
    %c0 = arith.constant 0 : index
    %c0_0 = arith.constant 0 : index
    %0 = vector.load %arg1[%c0, %c0_0] : memref<8x128xf32, #tpu.memory_space<vmem>>, vector<8x128xf32>
    %1 = arith.truncf %0 : vector<8x128xf32> to vector<8x128xbf16>
    %c0_1 = arith.constant 0 : index
    %c0_2 = arith.constant 0 : index
    %2 = vector.load %arg2[%c0_1, %c0_2] : memref<8x128xf32, #tpu.memory_space<vmem>>, vector<8x128xf32>
    %3 = arith.truncf %2 : vector<8x128xf32> to vector<8x128xbf16>
    %c0_3 = arith.constant 0 : index
    %c0_4 = arith.constant 0 : index
    %4 = vector.load %arg3[%c0_3, %c0_4] : memref<128x128xbf16, #tpu.memory_space<vmem>>, vector<128x128xbf16>
    %cst = arith.constant dense<0.000000e+00> : vector<8x128xf32>
    %5 = tpu.matmul %1, %4, %cst {dimension_numbers = #tpu.dot_dimension_numbers<[1], [0], [0], [1], [0, 0, 1, 1], [], []>} : vector<8x128xbf16>, vector<128x128xbf16>, vector<8x128xf32> -> vector<8x128xf32>
    %c0_5 = arith.constant 0 : index
    %c0_6 = arith.constant 0 : index
    %6 = vector.load %arg4[%c0_5, %c0_6] : memref<128x128xbf16, #tpu.memory_space<vmem>>, vector<128x128xbf16>
    %cst_7 = arith.constant dense<0.000000e+00> : vector<8x128xf32>
    %7 = tpu.matmul %3, %6, %cst_7 {dimension_numbers = #tpu.dot_dimension_numbers<[1], [0], [0], [1], [0, 0, 1, 1], [], []>} : vector<8x128xbf16>, vector<128x128xbf16>, vector<8x128xf32> -> vector<8x128xf32>
    %8 = arith.addf %5, %7 : vector<8x128xf32>
    %c0_8 = arith.constant 0 : index
    %c0_9 = arith.constant 0 : index
    %9 = vector.load %arg5[%c0_8, %c0_9] : memref<1x128xf32, #tpu.memory_space<vmem>>, vector<1x128xf32>
    %10 = vector.broadcast %9 : vector<1x128xf32> to vector<8x128xf32>
    %11 = arith.addf %8, %10 : vector<8x128xf32>
    %12 = math.tanh %11 : vector<8x128xf32>
    %13 = arith.truncf %12 : vector<8x128xf32> to vector<8x128xbf16>
    %c0_10 = arith.constant 0 : index
    %c0_11 = arith.constant 0 : index
    %14 = vector.load %arg6[%c0_10, %c0_11] : memref<128x128xbf16, #tpu.memory_space<vmem>>, vector<128x128xbf16>
    %cst_12 = arith.constant dense<0.000000e+00> : vector<8x128xf32>
    %15 = tpu.matmul %13, %14, %cst_12 {dimension_numbers = #tpu.dot_dimension_numbers<[1], [0], [0], [1], [0, 0, 1, 1], [], []>} : vector<8x128xbf16>, vector<128x128xbf16>, vector<8x128xf32> -> vector<8x128xf32>
    %c0_13 = arith.constant 0 : index
    %c0_14 = arith.constant 0 : index
    %16 = vector.load %arg7[%c0_13, %c0_14] : memref<1x128xf32, #tpu.memory_space<vmem>>, vector<1x128xf32>
    %17 = vector.broadcast %16 : vector<1x128xf32> to vector<8x128xf32>
    %18 = arith.addf %15, %17 : vector<8x128xf32>
    %c0_15 = arith.constant 0 : index
    %c0_16 = arith.constant 0 : index
    %19 = vector.load %arg8[%c0_15, %c0_16] : memref<8x128xf32, #tpu.memory_space<vmem>>, vector<8x128xf32>
    tpu.vector_store %arg8[%c0_15, %c0_16], %18 {strides = array<i32>} : memref<8x128xf32, #tpu.memory_space<vmem>>, vector<8x128xf32>,
    return
  }
  func.func @transform_0(%arg0: i32) -> (i32, i32) {
    %c0_i32 = arith.constant 0 : i32
    %c0_i32_0 = arith.constant 0 : i32
    return %arg0, %c0_i32 : i32, i32
  }
  func.func @transform_1(%arg0: i32) -> (i32, i32) {
    %c8_i32 = arith.constant 8 : i32
    %c0_i32 = arith.constant 0 : i32
    return %arg0, %c8_i32 : i32, i32
  }
  func.func @transform_2(%arg0: i32) -> (i32, i32) {
    %c0_i32 = arith.constant 0 : i32
    %c0_i32_0 = arith.constant 0 : i32
    %c0_i32_1 = arith.constant 0 : i32
    return %c0_i32, %c0_i32_0 : i32, i32
  }
  func.func @transform_3(%arg0: i32) -> (i32, i32) {
    %c0_i32 = arith.constant 0 : i32
    %c0_i32_0 = arith.constant 0 : i32
    %c0_i32_1 = arith.constant 0 : i32
    return %c0_i32, %c0_i32_0 : i32, i32
  }
  func.func @transform_4(%arg0: i32) -> (i32, i32) {
    %c0_i32 = arith.constant 0 : i32
    %c0_i32_0 = arith.constant 0 : i32
    %c0_i32_1 = arith.constant 0 : i32
    return %c0_i32, %c0_i32_0 : i32, i32
  }
  func.func @transform_5(%arg0: i32) -> (i32, i32) {
    %c0_i32 = arith.constant 0 : i32
    %c0_i32_0 = arith.constant 0 : i32
    %c0_i32_1 = arith.constant 0 : i32
    return %c0_i32, %c0_i32_0 : i32, i32
  }
  func.func @transform_6(%arg0: i32) -> (i32, i32) {
    %c0_i32 = arith.constant 0 : i32
    %c0_i32_0 = arith.constant 0 : i32
    %c0_i32_1 = arith.constant 0 : i32
    return %c0_i32, %c0_i32_0 : i32, i32
  }
  func.func @transform_7(%arg0: i32) -> (i32, i32) {
    %c0_i32 = arith.constant 0 : i32
    %c0_i32_0 = arith.constant 0 : i32
    return %arg0, %c0_i32 : i32, i32
  }
}

</mosaic_0001>

<bundles_post_ra>
// kernel: roberta_classification_head.1
= control target key start
LH: loop header
LB: loop body
LE: loop exit
PB: predicated region body
PF: predicated region fallthrough
CT: control target
= control target key end

     0   :  { %s532_s3 = inlined_call_operand.vmem [shape: bf16[128,128], index: 3, kind: input, shape index: {}]   ;;  %s533_s2 = inlined_call_operand.vmem [shape: bf16[128,128], index: 2, kind: input, shape index: {}]   ;;  %s534_s5 = inlined_call_operand.vmem [shape: bf16[128,128], index: 5, kind: input, shape index: {}]   ;;  %s535_s1 = inlined_call_operand.vmem [shape: f32[8,2048], index: 1, kind: input, shape index: {}, may-alias: {0,1}]   ;;  %s536_s0 = inlined_call_operand.vmem [shape: f32[8,2048], index: 0, kind: input, shape index: {}, may-alias: {0,1}]   ;;  %s537_s4 = inlined_call_operand.vmem [shape: f32[1,128], index: 4, kind: input, shape index: {}]   ;;  %s538_s6 = inlined_call_operand.vmem [shape: f32[1,128], index: 6, kind: input, shape index: {}]   ;;  %s539_s7 = inlined_call_operand.vmem [shape: f32[8,128], index: 7, kind: output, shape index: {}]  }
   0x1   :  { %v392_v0 = vld [vmem:[%s532_s3 + $0x38] sm:$0xff]  ;;  %v391_v2 = vld [vmem:[%s532_s3 + $0x30] sm:$0xff]  ;;  %v390_v4 = vld [vmem:[%s532_s3 + $0x28] sm:$0xff] }
   0x2   :  { %v384_v1 = vld [vmem:[%s533_s2 + $0x38] sm:$0xff]  ;;  %113 = vmatpush.bf16.msra.mxu0 %v392_v0  ;;  %v383_v3 = vld [vmem:[%s533_s2 + $0x30] sm:$0xff]  ;;  %v382_v5 = vld [vmem:[%s533_s2 + $0x28] sm:$0xff] }
   0x3   :  { %174 = vmatpush.bf16.msra.mxu1 %v384_v1  ;;  %v400_v6 = vld [vmem:[%s534_s5 + $0x38] sm:$0xff]  ;;  %v399_v7 = vld [vmem:[%s534_s5 + $0x30] sm:$0xff]  ;;  %v389_v8 = vld [vmem:[%s532_s3 + $0x20] sm:$0xff] }
   0x4   :  { %262 = vmatpush.bf16.msra.mxu2 %v400_v6  ;;  %v381_v9 = vld [vmem:[%s533_s2 + $0x20] sm:$0xff]  ;;  %v398_v10 = vld [vmem:[%s534_s5 + $0x28] sm:$0xff]  ;;  %v388_v11 = vld [vmem:[%s532_s3 + $0x18] sm:$0xff] }
   0x5   :  { %v380_v12 = vld [vmem:[%s533_s2 + $0x18] sm:$0xff]  ;;  %v397_v13 = vld [vmem:[%s534_s5 + $0x20] sm:$0xff]  ;;  %v387_v14 = vld [vmem:[%s532_s3 + $0x10] sm:$0xff] }
   0x6   :  { %114 = vmatpush.bf16.msra.mxu0 %v391_v2  ;;  %v379_v15 = vld [vmem:[%s533_s2 + $0x10] sm:$0xff]  ;;  %v396_v16 = vld [vmem:[%s534_s5 + $0x18] sm:$0xff]  ;;  %v386_v17 = vld [vmem:[%s532_s3 + $0x8] sm:$0xff] }
   0x7   :  { %175 = vmatpush.bf16.msra.mxu1 %v383_v3  ;;  %v378_v18 = vld [vmem:[%s533_s2 + $0x8] sm:$0xff]  ;;  %v385_v19 = vld [vmem:[%s532_s3] sm:$0xff]  ;;  %v395_v25 = vld [vmem:[%s534_s5 + $0x10] sm:$0xff] }
   0x8   :  { %263 = vmatpush.bf16.msra.mxu2 %v399_v7  ;;  %v377_v20 = vld [vmem:[%s533_s2] sm:$0xff]  ;;  %v394_v26 = vld [vmem:[%s534_s5 + $0x8] sm:$0xff] }
   0x9   :  { %v280_v21 = vld [vmem:[%s535_s1 + $0x40] sm:$0xff] }
   0xa   :  { %115 = vmatpush.bf16.msra.mxu0 %v390_v4  ;;  %v29_v22 = vld [vmem:[%s536_s0] sm:$0xff]  ;;  %v32_v23 = vpack.c.bf16 %v280_v21, %v280_v21 }
   0xb   :  { %176 = vmatpush.bf16.msra.mxu1 %v382_v5  ;;  %v30_v24 = vpack.c.bf16 %v29_v22, %v29_v22  ;;  %v393_v27 = vld [vmem:[%s534_s5] sm:$0xff] }
   0xc   :  { %264 = vmatpush.bf16.msra.mxu2 %v398_v10  ;;  %v401_v28 = vld [vmem:[%s537_s4] ss:$0 sm:$0xff] }
   0xd   :  { %v402_v37 = vld [vmem:[%s538_s6] ss:$0 sm:$0xff] }
   0xe   :  { %116 = vmatpush.bf16.msra.mxu0 %v389_v8 }
   0xf   :  { %177 = vmatpush.bf16.msra.mxu1 %v381_v9 }
  0x10   :  { %265 = vmatpush.bf16.msra.mxu2 %v397_v13 }
  0x12   :  { %117 = vmatpush.bf16.msra.mxu0 %v388_v11 }
  0x13   :  { %178 = vmatpush.bf16.msra.mxu1 %v380_v12 }
  0x14   :  { %266 = vmatpush.bf16.msra.mxu2 %v396_v16 }
  0x16   :  { %118 = vmatpush.bf16.msra.mxu0 %v387_v14 }
  0x17   :  { %179 = vmatpush.bf16.msra.mxu1 %v379_v15 }
  0x18   :  { %267 = vmatpush.bf16.msra.mxu2 %v395_v25 }
  0x1a   :  { %119 = vmatpush.bf16.msra.mxu0 %v386_v17 }
  0x1b   :  { %180 = vmatpush.bf16.msra.mxu1 %v378_v18 }
  0x1c   :  { %268 = vmatpush.bf16.msra.mxu2 %v394_v26 }
  0x1e   :  { %120 = vmatpush.bf16.msra.mxu0 %v385_v19 }
  0x1f   :  { %181 = vmatpush.bf16.msra.mxu1 %v377_v20 }
  0x20   :  { %269 = vmatpush.bf16.msra.mxu2 %v393_v27 }
  0x21   :  { %121 = vmatmul.bf16.vlgmr.msra.gmra.mxu0 %v32_v23 }
  0x22   :  { %182 = vmatmul.bf16.vlgmr.msra.gmra.mxu1 %v30_v24 }
  0x9e   :  { %v122_v29 = vpop.f32.mrf.mxu0 }
  0x9f   :  { %v183_v30 = vpop.f32.mrf.mxu1 }
  0xa0   :  { %v184_v31 = vadd.f32 %v183_v30, %v122_v29 }
  0xa2   :  { %v191_v32 = vadd.f32 %v401_v28, %v184_v31 }
  0xa4   :  { %403 = vtanh.f32 %v191_v32 }
  0xa6   :  { %v124_v33 = vpop.f32.mrf.mxu0 }
  0xa7   :  { %v185_v34 = vpop.f32.mrf.mxu1 }
  0xaa   :  { %v404_v35 = vpop.eup %403 }
  0xab   :  { %v193_v36 = vpack.c.bf16 %v404_v35, %v404_v35 }
  0xad   :  { %270 = vmatmul.bf16.vlgmr.msra.gmra.mxu2 %v193_v36 }
 0x130   :  { %v271_v38 = vpop.f32.mrf.mxu2 }
 0x131   :  { %v272_v39 = vadd.f32 %v402_v37, %v271_v38 }
 0x133   :  { %275 = vst [vmem:[%s539_s7] sm:$0xff] %v272_v39 }
 0x138   :  { %v273_v40 = vpop.f32.mrf.mxu2 }

</bundles_post_ra>
